<compile_context>
chip_gen: v5e
topology: v5e:2x2
jax: 0.10.0
libtpu: 0.0.40
codegen_flags: <defaults>
</compile_context>

<pallas_src>
import functools
from typing import Any, NamedTuple

import jax
import jax.numpy as jnp
from jax.experimental import pallas as pl
from jax.experimental.pallas import tpu as pltpu


def _round_up(x: int, m: int) -> int:
    return ((x + m - 1) // m) * m


def _pad2d(a, rows: int, cols: int, dtype):
    """Cast + zero-pad a 2-D array, skipping the copy when no padding is needed."""
    if a.dtype != dtype:
        a = a.astype(dtype)
    r, c = a.shape
    if r == rows and c == cols:
        return a
    return jnp.pad(a, ((0, rows - r), (0, cols - c)))


class PreparedFCNetParams(NamedTuple):
    flat_wb: tuple      # (w1, b1, w2, b2, ...): w padded & in compute_dtype, b padded f32
    feats: tuple        # logical feature widths [in_feats, *hiddens, n_classes]
    pfeats: tuple       # 128-lane-padded feature widths
    compute_dtype: Any


def prepare_fcnet_params(params, compute_dtype=jnp.bfloat16) -> PreparedFCNetParams:
    """One-time pad + cast of weights/biases (hoisted out of the per-call path).

    params: list of (w, b) with w: (in_feats, out_feats) [transposed vs PyTorch],
            b: (out_feats,) or (1, out_feats).
    """
    feats = (params[0][0].shape[0],) + tuple(w.shape[1] for (w, _) in params)
    pfeats = tuple(_round_up(f, 128) for f in feats)
    flat_wb = []
    for li, (w, b) in enumerate(params):
        flat_wb.append(_pad2d(w, pfeats[li], pfeats[li + 1], compute_dtype))
        flat_wb.append(_pad2d(b.reshape(1, -1), 1, pfeats[li + 1], jnp.float32))
    return PreparedFCNetParams(tuple(flat_wb), feats, pfeats, compute_dtype)


def _default_epilogue_dtype(compute_dtype):
    """bf16 LeakyReLU on chips with a bf16 VPU (v6e/v7x); f32 on older chips."""
    try:
        kind = jax.devices()[0].device_kind.lower()
    except Exception:
        kind = ""
    if any(v in kind for v in ("v2", "v3", "v4", "v5")):
        return jnp.float32
    return compute_dtype


def _pick_tile_m(n: int, max_tile_m: int):
    """Pick batch tile size tm and padded batch mp (tm always divides mp)."""
    if n < 128:
        tm = _round_up(max(n, 1), 8)          # sublane-aligned single tile
        return tm, tm
    mp = _round_up(n, 128)                    # tm is a multiple of 128 (v5e MXU)
    tm, t = 128, 128
    while t <= min(max_tile_m, mp):           # largest multiple-of-128 divisor of mp
        if mp % t == 0:
            tm = t
        t += 128
    # If the whole batch landed in one tile but it is big enough, split in two so
    # the "parallel" grid axis can actually shard across v7x's two TensorCores.
    if tm == mp and mp >= 256 and (mp // 2) % 128 == 0:
        tm = mp // 2
    return tm, mp


def _fcnet_fused_kernel(*refs, n_layers: int, slope: float,
                        compute_dtype, epilogue_dtype):
    """Fused FCNet forward.

    refs = (x_ref, w1_ref, b1_ref, ..., wL_ref, bL_ref, o_ref)
      x_ref : (tm, K_pad)        input dtype (f32); cast to compute_dtype in-kernel
      w_ref : (in_pad, out_pad)  compute_dtype (bf16)
      b_ref : (1, out_pad)       f32
      o_ref : (tm, out_pad_last) out dtype (bf16 by default)
    """
    x_ref = refs[0]
    o_ref = refs[-1]
    wb_refs = refs[1:-1]

    # In-kernel cast: saves a separate XLA pad/cast pre-pass over x in HBM.
    h = x_ref[...].astype(compute_dtype)
    for li in range(n_layers):
        w_ref = wb_refs[2 * li]
        b_ref = wb_refs[2 * li + 1]
        # MXU matmul in low precision, f32 accumulation.
        y = jnp.dot(h, w_ref[...], preferred_element_type=jnp.float32)
        y = y + b_ref[...]                               # bias add in f32
        if li < n_layers - 1:
            y = y.astype(epilogue_dtype)                 # bf16 epilogue on v6e/v7x
            y = jnp.where(y > 0, y, slope * y)           # LeakyReLU(negative_slope)
            h = y.astype(compute_dtype)
        else:
            h = y
    o_ref[...] = h.astype(o_ref.dtype)


def fcnet_forward(x_nchw, prep: PreparedFCNetParams, *, slope: float = 0.2,
                  max_tile_m: int = 512, out_dtype=jnp.bfloat16,
                  epilogue_dtype=None):
    """Forward pass of FCNet: flatten -> [Linear + LeakyReLU]* -> Linear.

    Returns logits (N, n_classes) in `out_dtype` (bf16 by default).
    """
    n = x_nchw.shape[0]
    x = x_nchw.reshape(n, -1)                 # img_flat = x.view(x.size(0), -1)
    feats, pfeats = prep.feats, prep.pfeats
    assert x.shape[1] == feats[0], (x.shape, feats)
    n_layers = len(feats) - 1
    if epilogue_dtype is None:
        epilogue_dtype = _default_epilogue_dtype(prep.compute_dtype)

    tm, mp = _pick_tile_m(n, max_tile_m)
    grid_m = mp // tm

    # Pad x only when actually needed (no-op for in_feats % 128 == 0, n % tm == 0);
    # keep the original dtype -- the bf16 cast happens inside the kernel.
    xp = _pad2d(x, mp, pfeats[0], x.dtype)

    # Constant operands: single-buffer when the grid has >1 step (they are fetched
    # once and never revisited) -> VMEM headroom for bigger batch tiles.
    wb_kwargs = {"pipeline_mode": pl.Buffered(1)} if grid_m > 1 else {}

    in_specs = [pl.BlockSpec((tm, pfeats[0]), lambda i: (i, 0))]
    for li in range(n_layers):
        in_specs.append(pl.BlockSpec((pfeats[li], pfeats[li + 1]),
                                     lambda i: (0, 0), **wb_kwargs))
        in_specs.append(pl.BlockSpec((1, pfeats[li + 1]),
                                     lambda i: (0, 0), **wb_kwargs))
    out_spec = pl.BlockSpec((tm, pfeats[-1]), lambda i: (i, 0))

    # TODO(synk): for much wider nets (e.g. 4k+ hidden on v7x's 64 MiB VMEM), add a
    # K grid axis marked "arbitrary" with an f32 VMEM accumulator for the first
    # layer instead of keeping the full-K W1 block resident.

    kernel = functools.partial(
        _fcnet_fused_kernel, n_layers=n_layers, slope=slope,
        compute_dtype=prep.compute_dtype, epilogue_dtype=epilogue_dtype)

    out_padded = pl.pallas_call(
        kernel,
        out_shape=jax.ShapeDtypeStruct((mp, pfeats[-1]), out_dtype),
        grid=(grid_m,),
        in_specs=in_specs,
        out_specs=out_spec,
        compiler_params=pltpu.CompilerParams(
            dimension_semantics=("parallel",),   # split batch tiles across TCs (v7x)
            vmem_limit_bytes=32 * 1024 * 1024,   # safe on v5e/v6e/v7x; usage is tiny
        ),
    )(xp, *prep.flat_wb)

    return out_padded[:n, :feats[-1]]


def init_fcnet_params(key, in_feats, n_hiddens, n_classes):
    """Deterministic params mimicking PyTorch nn.Linear default init.

    Weight (out, in) -> stored here as (in, out); uniform(-1/sqrt(in), 1/sqrt(in)).
    """
    n_feats = [in_feats, *n_hiddens, n_classes]
    params = []
    for fan_in, fan_out in zip(n_feats[:-1], n_feats[1:]):
        key, kw, kb = jax.random.split(key, 3)
        bound = 1.0 / jnp.sqrt(jnp.float32(fan_in))
        w = jax.random.uniform(kw, (fan_in, fan_out), jnp.float32, -bound, bound)
        b = jax.random.uniform(kb, (1, fan_out), jnp.float32, -bound, bound)
        params.append((w, b))
    return params


def fcnet_forward_ref(x_nchw, params, *, slope: float = 0.2,
                      compute_dtype=jnp.bfloat16):
    """Pure-JAX reference with matching precision (bf16 MXU inputs, f32 accum)."""
    n = x_nchw.shape[0]
    h = x_nchw.reshape(n, -1).astype(compute_dtype)
    n_layers = len(params)
    for li, (w, b) in enumerate(params):
        y = jnp.dot(h, w.astype(compute_dtype),
                    preferred_element_type=jnp.float32) + b.reshape(1, -1)
        if li != n_layers - 1:
            y = jnp.where(y > 0, y, slope * y)
            h = y.astype(compute_dtype)
        else:
            h = y
    return h


if __name__ == "__main__":
    key = jax.random.PRNGKey(0)
    kx, kp = jax.random.split(key)

    # Small shapes consistent with the module: batch=2, C=4, H=W=16
    # => in_feats = 4*16*16 = 1024, hidden widths [32, 32], n_classes = 10.
    batch, C, H, W = 2, 4, 16, 16
    in_feats = C * H * W
    n_hiddens = [32, 32]
    n_classes = 10

    x = jax.random.normal(kx, (batch, C, H, W), jnp.float32)
    params = init_fcnet_params(kp, in_feats, n_hiddens, n_classes)

    # One-time parameter prep (pad + bf16 cast), reused across forward calls.
    prep = prepare_fcnet_params(params)

    logits = fcnet_forward(x, prep)
    logits = jax.block_until_ready(logits)

    ref = fcnet_forward_ref(x, params)
    assert logits.shape == (batch, n_classes), logits.shape
    logits_f32 = logits.astype(jnp.float32)
    max_err = float(jnp.max(jnp.abs(logits_f32 - ref)))
    assert jnp.allclose(logits_f32, ref, atol=2e-2, rtol=2e-2), (
        "mismatch vs reference", max_err)

    # TODO(synk): compute_loss (BCEWithLogitsLoss) is not part of forward(); not kernelized.
    print("KERNEL_OK")
</pallas_src>

<mosaic_0001>
module attributes {stable_mosaic.version = 11 : i64} {
  func.func @_fcnet_fused_kernel(%arg0: i32, %arg1: memref<8x1024xf32, #tpu.memory_space<vmem>>, %arg2: memref<1024x128xbf16, #tpu.memory_space<vmem>>, %arg3: memref<1x128xf32, #tpu.memory_space<vmem>>, %arg4: memref<128x128xbf16, #tpu.memory_space<vmem>>, %arg5: memref<1x128xf32, #tpu.memory_space<vmem>>, %arg6: memref<128x128xbf16, #tpu.memory_space<vmem>>, %arg7: memref<1x128xf32, #tpu.memory_space<vmem>>, %arg8: memref<8x128xbf16, #tpu.memory_space<vmem>>) attributes {dimension_semantics = [#tpu.dimension_semantics<parallel>], iteration_bounds = array<i64: 1>, scalar_prefetch = 0 : i64, scratch_operands = 0 : i64, tpu.core_type = #tpu.core_type<tc>, window_params = [{transform_indices = @transform_0, window_bounds = array<i64: 8, 1024>}, {pipeline_mode = #tpu.pipeline_mode<synchronous>, transform_indices = @transform_1, window_bounds = array<i64: 1024, 128>}, {pipeline_mode = #tpu.pipeline_mode<synchronous>, transform_indices = @transform_2, window_bounds = array<i64: 1, 128>}, {pipeline_mode = #tpu.pipeline_mode<synchronous>, transform_indices = @transform_3, window_bounds = array<i64: 128, 128>}, {pipeline_mode = #tpu.pipeline_mode<synchronous>, transform_indices = @transform_4, window_bounds = array<i64: 1, 128>}, {pipeline_mode = #tpu.pipeline_mode<synchronous>, transform_indices = @transform_5, window_bounds = array<i64: 128, 128>}, {pipeline_mode = #tpu.pipeline_mode<synchronous>, transform_indices = @transform_6, window_bounds = array<i64: 1, 128>}, {transform_indices = @transform_7, window_bounds = array<i64: 8, 128>}]} {
    %c0 = arith.constant 0 : index
    %c0_0 = arith.constant 0 : index
    %0 = vector.load %arg1[%c0, %c0_0] : memref<8x1024xf32, #tpu.memory_space<vmem>>, vector<8x1024xf32>
    %1 = arith.truncf %0 : vector<8x1024xf32> to vector<8x1024xbf16>
    %c0_1 = arith.constant 0 : index
    %c0_2 = arith.constant 0 : index
    %2 = vector.load %arg2[%c0_1, %c0_2] : memref<1024x128xbf16, #tpu.memory_space<vmem>>, vector<1024x128xbf16>
    %cst = arith.constant dense<0.000000e+00> : vector<8x128xf32>
    %3 = tpu.matmul %1, %2, %cst {dimension_numbers = #tpu.dot_dimension_numbers<[1], [0], [0], [1], [0, 0, 1, 1], [], []>} : vector<8x1024xbf16>, vector<1024x128xbf16>, vector<8x128xf32> -> vector<8x128xf32>
    %c0_3 = arith.constant 0 : index
    %c0_4 = arith.constant 0 : index
    %4 = vector.load %arg3[%c0_3, %c0_4] : memref<1x128xf32, #tpu.memory_space<vmem>>, vector<1x128xf32>
    %5 = vector.broadcast %4 : vector<1x128xf32> to vector<8x128xf32>
    %6 = arith.addf %3, %5 : vector<8x128xf32>
    %7 = arith.truncf %6 : vector<8x128xf32> to vector<8x128xbf16>
    %cst_5 = arith.constant 0.000000e+00 : bf16
    %8 = vector.broadcast %cst_5 : bf16 to vector<8x128xbf16>
    %9 = arith.cmpf ogt, %7, %8 : vector<8x128xbf16>
    %cst_6 = arith.constant 2.001950e-01 : bf16
    %10 = vector.broadcast %cst_6 : bf16 to vector<8x128xbf16>
    %11 = arith.mulf %10, %7 : vector<8x128xbf16>
    %12 = arith.select %9, %7, %11 : vector<8x128xi1>, vector<8x128xbf16>
    %c0_7 = arith.constant 0 : index
    %c0_8 = arith.constant 0 : index
    %13 = vector.load %arg4[%c0_7, %c0_8] : memref<128x128xbf16, #tpu.memory_space<vmem>>, vector<128x128xbf16>
    %cst_9 = arith.constant dense<0.000000e+00> : vector<8x128xf32>
    %14 = tpu.matmul %12, %13, %cst_9 {dimension_numbers = #tpu.dot_dimension_numbers<[1], [0], [0], [1], [0, 0, 1, 1], [], []>} : vector<8x128xbf16>, vector<128x128xbf16>, vector<8x128xf32> -> vector<8x128xf32>
    %c0_10 = arith.constant 0 : index
    %c0_11 = arith.constant 0 : index
    %15 = vector.load %arg5[%c0_10, %c0_11] : memref<1x128xf32, #tpu.memory_space<vmem>>, vector<1x128xf32>
    %16 = vector.broadcast %15 : vector<1x128xf32> to vector<8x128xf32>
    %17 = arith.addf %14, %16 : vector<8x128xf32>
    %18 = arith.truncf %17 : vector<8x128xf32> to vector<8x128xbf16>
    %cst_12 = arith.constant 0.000000e+00 : bf16
    %19 = vector.broadcast %cst_12 : bf16 to vector<8x128xbf16>
    %20 = arith.cmpf ogt, %18, %19 : vector<8x128xbf16>
    %cst_13 = arith.constant 2.001950e-01 : bf16
    %21 = vector.broadcast %cst_13 : bf16 to vector<8x128xbf16>
    %22 = arith.mulf %21, %18 : vector<8x128xbf16>
    %23 = arith.select %20, %18, %22 : vector<8x128xi1>, vector<8x128xbf16>
    %c0_14 = arith.constant 0 : index
    %c0_15 = arith.constant 0 : index
    %24 = vector.load %arg6[%c0_14, %c0_15] : memref<128x128xbf16, #tpu.memory_space<vmem>>, vector<128x128xbf16>
    %cst_16 = arith.constant dense<0.000000e+00> : vector<8x128xf32>
    %25 = tpu.matmul %23, %24, %cst_16 {dimension_numbers = #tpu.dot_dimension_numbers<[1], [0], [0], [1], [0, 0, 1, 1], [], []>} : vector<8x128xbf16>, vector<128x128xbf16>, vector<8x128xf32> -> vector<8x128xf32>
    %c0_17 = arith.constant 0 : index
    %c0_18 = arith.constant 0 : index
    %26 = vector.load %arg7[%c0_17, %c0_18] : memref<1x128xf32, #tpu.memory_space<vmem>>, vector<1x128xf32>
    %27 = vector.broadcast %26 : vector<1x128xf32> to vector<8x128xf32>
    %28 = arith.addf %25, %27 : vector<8x128xf32>
    %29 = arith.truncf %28 : vector<8x128xf32> to vector<8x128xbf16>
    %c0_19 = arith.constant 0 : index
    %c0_20 = arith.constant 0 : index
    %30 = vector.load %arg8[%c0_19, %c0_20] : memref<8x128xbf16, #tpu.memory_space<vmem>>, vector<8x128xbf16>
    tpu.vector_store %arg8[%c0_19, %c0_20], %29 {strides = array<i32>} : memref<8x128xbf16, #tpu.memory_space<vmem>>, vector<8x128xbf16>,
    return
  }
  func.func @transform_0(%arg0: i32) -> (i32, i32) {
    %c0_i32 = arith.constant 0 : i32
    %c0_i32_0 = arith.constant 0 : i32
    return %arg0, %c0_i32 : i32, i32
  }
  func.func @transform_1(%arg0: i32) -> (i32, i32) {
    %c0_i32 = arith.constant 0 : i32
    %c0_i32_0 = arith.constant 0 : i32
    %c0_i32_1 = arith.constant 0 : i32
    return %c0_i32, %c0_i32_0 : i32, i32
  }
  func.func @transform_2(%arg0: i32) -> (i32, i32) {
    %c0_i32 = arith.constant 0 : i32
    %c0_i32_0 = arith.constant 0 : i32
    %c0_i32_1 = arith.constant 0 : i32
    return %c0_i32, %c0_i32_0 : i32, i32
  }
  func.func @transform_3(%arg0: i32) -> (i32, i32) {
    %c0_i32 = arith.constant 0 : i32
    %c0_i32_0 = arith.constant 0 : i32
    %c0_i32_1 = arith.constant 0 : i32
    return %c0_i32, %c0_i32_0 : i32, i32
  }
  func.func @transform_4(%arg0: i32) -> (i32, i32) {
    %c0_i32 = arith.constant 0 : i32
    %c0_i32_0 = arith.constant 0 : i32
    %c0_i32_1 = arith.constant 0 : i32
    return %c0_i32, %c0_i32_0 : i32, i32
  }
  func.func @transform_5(%arg0: i32) -> (i32, i32) {
    %c0_i32 = arith.constant 0 : i32
    %c0_i32_0 = arith.constant 0 : i32
    %c0_i32_1 = arith.constant 0 : i32
    return %c0_i32, %c0_i32_0 : i32, i32
  }
  func.func @transform_6(%arg0: i32) -> (i32, i32) {
    %c0_i32 = arith.constant 0 : i32
    %c0_i32_0 = arith.constant 0 : i32
    %c0_i32_1 = arith.constant 0 : i32
    return %c0_i32, %c0_i32_0 : i32, i32
  }
  func.func @transform_7(%arg0: i32) -> (i32, i32) {
    %c0_i32 = arith.constant 0 : i32
    %c0_i32_0 = arith.constant 0 : i32
    return %arg0, %c0_i32 : i32, i32
  }
}

</mosaic_0001>

<bundles_post_ra>
// kernel: tpu_custom_call.1
= control target key start
LH: loop header
LB: loop body
LE: loop exit
PB: predicated region body
PF: predicated region fallthrough
CT: control target
= control target key end

     0   :  { %12 = vsyncpa [#allocation3], 0  ;;  %s1530_s0 = inlined_call_operand.hbm [shape: f32[8,1024], index: 0, kind: input, shape index: {}]   ;;  %s1531_s1 = inlined_call_operand.hbm [shape: bf16[1024,128], index: 1, kind: input, shape index: {}]   ;;  %s1532_s2 = inlined_call_operand.vmem [shape: f32[1,128], index: 2, kind: input, shape index: {}]   ;;  %s1533_s3 = inlined_call_operand.hbm [shape: bf16[128,128], index: 3, kind: input, shape index: {}]   ;;  %s1534_s4 = inlined_call_operand.vmem [shape: f32[1,128], index: 4, kind: input, shape index: {}]   ;;  %s1535_s5 = inlined_call_operand.hbm [shape: bf16[128,128], index: 5, kind: input, shape index: {}]   ;;  %s1536_s6 = inlined_call_operand.vmem [shape: f32[1,128], index: 6, kind: input, shape index: {}]   ;;  %s1537_s7 = inlined_call_operand.hbm [shape: bf16[8,128], index: 7, kind: output, shape index: {}]  }
   0x1   :  { %13 = vsyncpa [#allocation6], 0 }
   0x2   :  { %14 = vsyncpa [#allocation9], 0  ;;  %s31_s26 = sshll.u32 %s1531_s1, 4  ;;  %s32_s26 = int_to_ptr.hbm [resolvable:$true] %s31_s26 }
   0x3   :  { %15 = vsyncpa [#allocation4], 0  ;;  %s1459_s27 = smov [#allocation5]   ;;  %s21_s8 = sshll.u32 %s1530_s0, 4  ;;  %s22_s8 = int_to_ptr.hbm [resolvable:$true] %s21_s8 }
   0x4   :  { %s33_s28 = sshll.u32 %s1459_s27, 4  ;;  %s1460_s9 = smov 64   ;;  %s34_s28 = int_to_ptr.vmem [resolvable:$true] %s33_s28 }
   0x5   :  { %s1461_s10 = smov 4   ;;  %s1462_s11 = smov [#allocation2]  }
   0x6   :  { %39 = dma.hbm_to_vmem [thread:$0]  %s32_s26, 8192, %s34_s28, [#allocation6], %s1460_s9, %s1460_s9, %s1461_s10  }
   0x7   :  { %s23_s12 = sshll.u32 %s1462_s11, 4  ;;  %s46_s15 = sshll.u32 %s1533_s3, 4  ;;  %s24_s12 = int_to_ptr.vmem [resolvable:$true] %s23_s12  ;;  %s47_s15 = int_to_ptr.hbm [resolvable:$true] %s46_s15 }
   0x8   :  { %26 = dma.hbm_to_vmem [thread:$0]  %s22_s8, 1024, %s24_s12, [#allocation3]  }
   0x9   :  { %s61_s17 = sshll.u32 %s1535_s5, 4  ;;  %s1463_s18 = smov [#allocation7]   ;;  %s62_s17 = int_to_ptr.hbm [resolvable:$true] %s61_s17 }
   0xa   :  { %s48_s19 = sshll.u32 %s1463_s18, 4  ;;  %s1464_s0 = smov [#allocation8]   ;;  %s49_s19 = int_to_ptr.vmem [resolvable:$true] %s48_s19 }
   0xb   :  { %54 = dma.hbm_to_vmem [thread:$0]  %s47_s15, 1024, %s49_s19, [#allocation6], %s1460_s9, %s1460_s9, %s1461_s10  }
   0xc   :  { %s63_s20 = sshll.u32 %s1464_s0, 4  ;;  %s64_s20 = int_to_ptr.vmem [resolvable:$true] %s63_s20 }
   0xd   :  { %69 = dma.hbm_to_vmem [thread:$0]  %s62_s17, 1024, %s64_s20, [#allocation9], %s1460_s9, %s1460_s9, %s1461_s10  }
   0xe   :  { %1451 = dma.done.wait [#allocation3], 1024  }
   0xf   :  { %1452 = vsyncadd [#allocation3], 4294966272 }
  0x10   :  { %1453 = dma.done.wait [#allocation6], 9216  }
  0x11   :  { %1454 = vsyncadd [#allocation6], 4294958080 }
  0x12   :  { %1455 = dma.done.wait [#allocation9], 1024  }
  0x13   :  { %1456 = vsyncadd [#allocation9], 4294966272  ;;  %v1248_v0 = vld [vmem:[#allocation5 + $0x38] sm:$0xff]  ;;  %v1247_v4 = vld [vmem:[#allocation5 + $0x30] sm:$0xff]  ;;  %s1465_s24 = smov [#allocation10]   ;;  %s909_s27 = sshll.u32 %s1537_s7, 4  ;;  %s910_s27 = int_to_ptr.hbm [resolvable:$true] %s909_s27 }
  0x14   :  { %v1256_v1 = vld [vmem:[#allocation5 + $0x78] sm:$0xff]  ;;  %620 = vmatpush.bf16.msra.mxu0 %v1248_v0  ;;  %v1255_v5 = vld [vmem:[#allocation5 + $0x70] sm:$0xff]  ;;  %v1246_v8 = vld [vmem:[#allocation5 + $0x28] sm:$0xff]  ;;  %s907_s25 = sshll.u32 %s1465_s24, 4  ;;  %s908_s25 = int_to_ptr.vmem [resolvable:$true] %s907_s25 }
  0x15   :  { %v1264_v2 = vld [vmem:[#allocation5 + $0xb8] sm:$0xff]  ;;  %633 = vmatpush.bf16.msra.mxu1 %v1256_v1  ;;  %v1263_v6 = vld [vmem:[#allocation5 + $0xb0] sm:$0xff]  ;;  %v1254_v9 = vld [vmem:[#allocation5 + $0x68] sm:$0xff] }
  0x16   :  { %v1272_v3 = vld [vmem:[#allocation5 + $0xf8] sm:$0xff]  ;;  %646 = vmatpush.bf16.msra.mxu2 %v1264_v2  ;;  %v1271_v7 = vld [vmem:[#allocation5 + $0xf0] sm:$0xff]  ;;  %v1262_v10 = vld [vmem:[#allocation5 + $0xa8] sm:$0xff] }
  0x17   :  { %659 = vmatpush.bf16.msra.mxu3 %v1272_v3  ;;  %v1270_v11 = vld [vmem:[#allocation5 + $0xe8] sm:$0xff]  ;;  %v1245_v12 = vld [vmem:[#allocation5 + $0x20] sm:$0xff]  ;;  %v1244_v16 = vld [vmem:[#allocation5 + $0x18] sm:$0xff] }
  0x18   :  { %621 = vmatpush.bf16.msra.mxu0 %v1247_v4  ;;  %v1253_v13 = vld [vmem:[#allocation5 + $0x60] sm:$0xff]  ;;  %v1252_v17 = vld [vmem:[#allocation5 + $0x58] sm:$0xff]  ;;  %v1243_v20 = vld [vmem:[#allocation5 + $0x10] sm:$0xff] }
  0x19   :  { %634 = vmatpush.bf16.msra.mxu1 %v1255_v5  ;;  %v1261_v14 = vld [vmem:[#allocation5 + $0xa0] sm:$0xff]  ;;  %v1260_v18 = vld [vmem:[#allocation5 + $0x98] sm:$0xff]  ;;  %v1251_v21 = vld [vmem:[#allocation5 + $0x50] sm:$0xff] }
  0x1a   :  { %647 = vmatpush.bf16.msra.mxu2 %v1263_v6  ;;  %v1269_v15 = vld [vmem:[#allocation5 + $0xe0] sm:$0xff]  ;;  %v1268_v19 = vld [vmem:[#allocation5 + $0xd8] sm:$0xff]  ;;  %v1259_v22 = vld [vmem:[#allocation5 + $0x90] sm:$0xff] }
  0x1b   :  { %660 = vmatpush.bf16.msra.mxu3 %v1271_v7  ;;  %v1267_v23 = vld [vmem:[#allocation5 + $0xd0] sm:$0xff]  ;;  %v1242_v24 = vld [vmem:[#allocation5 + $0x8] sm:$0xff]  ;;  %v1241_v28 = vld [vmem:[#allocation5] sm:$0xff] }
  0x1c   :  { %622 = vmatpush.bf16.msra.mxu0 %v1246_v8  ;;  %v1250_v25 = vld [vmem:[#allocation5 + $0x48] sm:$0xff]  ;;  %v1249_v29 = vld [vmem:[#allocation5 + $0x40] sm:$0xff]  ;;  %v1280_v32 = vld [vmem:[#allocation5 + $0x138] sm:$0xff] }
  0x1d   :  { %635 = vmatpush.bf16.msra.mxu1 %v1254_v9  ;;  %v1258_v26 = vld [vmem:[#allocation5 + $0x88] sm:$0xff]  ;;  %v1257_v30 = vld [vmem:[#allocation5 + $0x80] sm:$0xff]  ;;  %v90_v33 = vld [vmem:[#allocation2 + $0x10] sm:$0xff] }
  0x1e   :  { %648 = vmatpush.bf16.msra.mxu2 %v1262_v10  ;;  %v1266_v27 = vld [vmem:[#allocation5 + $0xc8] sm:$0xff]  ;;  %v1265_v31 = vld [vmem:[#allocation5 + $0xc0] sm:$0xff]  ;;  %v1288_v35 = vld [vmem:[#allocation5 + $0x178] sm:$0xff]  ;;  %v98_v40 = vpack.c.bf16 %v90_v33, %v90_v33 }
  0x1f   :  { %661 = vmatpush.bf16.msra.mxu3 %v1270_v11  ;;  %v88_v34 = vld [vmem:[#allocation2] sm:$0xff]  ;;  %v91_v36 = vld [vmem:[#allocation2 + $0x18] sm:$0xff]  ;;  %v89_v37 = vld [vmem:[#allocation2 + $0x8] sm:$0xff] }
  0x20   :  { %623 = vmatpush.bf16.msra.mxu0 %v1245_v12  ;;  %v1296_v38 = vld [vmem:[#allocation5 + $0x1b8] sm:$0xff]  ;;  %v96_v41 = vpack.c.bf16 %v88_v34, %v88_v34  ;;  %v99_v42 = vpack.c.bf16 %v91_v36, %v91_v36  ;;  %v97_v43 = vpack.c.bf16 %v89_v37, %v89_v37  ;;  %v1279_v44 = vld [vmem:[#allocation5 + $0x130] sm:$0xff]  ;;  %v1278_v48 = vld [vmem:[#allocation5 + $0x128] sm:$0xff] }
  0x21   :  { %636 = vmatpush.bf16.msra.mxu1 %v1253_v13  ;;  %v1304_v39 = vld [vmem:[#allocation5 + $0x1f8] sm:$0xff]  ;;  %v1287_v45 = vld [vmem:[#allocation5 + $0x170] sm:$0xff]  ;;  %v1286_v49 = vld [vmem:[#allocation5 + $0x168] sm:$0xff] }
  0x22   :  { %649 = vmatpush.bf16.msra.mxu2 %v1261_v14  ;;  %v1295_v46 = vld [vmem:[#allocation5 + $0x1b0] sm:$0xff]  ;;  %v1294_v50 = vld [vmem:[#allocation5 + $0x1a8] sm:$0xff]  ;;  %v1277_v52 = vld [vmem:[#allocation5 + $0x120] sm:$0xff] }
  0x23   :  { %662 = vmatpush.bf16.msra.mxu3 %v1269_v15  ;;  %v1303_v47 = vld [vmem:[#allocation5 + $0x1f0] sm:$0xff]  ;;  %v1302_v51 = vld [vmem:[#allocation5 + $0x1e8] sm:$0xff]  ;;  %v1285_v53 = vld [vmem:[#allocation5 + $0x160] sm:$0xff] }
  0x24   :  { %624 = vmatpush.bf16.msra.mxu0 %v1244_v16  ;;  %v1293_v54 = vld [vmem:[#allocation5 + $0x1a0] sm:$0xff]  ;;  %v1276_v56 = vld [vmem:[#allocation5 + $0x118] sm:$0xff]  ;;  %v1275_v60 = vld [vmem:[#allocation5 + $0x110] sm:$0xff] }
  0x25   :  { %637 = vmatpush.bf16.msra.mxu1 %v1252_v17  ;;  %v1301_v55 = vld [vmem:[#allocation5 + $0x1e0] sm:$0xff]  ;;  %v1284_v57 = vld [vmem:[#allocation5 + $0x158] sm:$0xff]  ;;  %v1283_v61 = vld [vmem:[#allocation5 + $0x150] sm:$0xff] }
  0x26   :  { %650 = vmatpush.bf16.msra.mxu2 %v1260_v18  ;;  %v1292_v58 = vld [vmem:[#allocation5 + $0x198] sm:$0xff]  ;;  %v1291_v62 = vld [vmem:[#allocation5 + $0x190] sm:$0xff]  ;;  %v1274_v0 = vld [vmem:[#allocation5 + $0x108] sm:$0xff] }
  0x27   :  { %663 = vmatpush.bf16.msra.mxu3 %v1268_v19  ;;  %v1300_v59 = vld [vmem:[#allocation5 + $0x1d8] sm:$0xff]  ;;  %v1299_v63 = vld [vmem:[#allocation5 + $0x1d0] sm:$0xff]  ;;  %v1282_v1 = vld [vmem:[#allocation5 + $0x148] sm:$0xff] }
  0x28   :  { %625 = vmatpush.bf16.msra.mxu0 %v1243_v20  ;;  %v1290_v2 = vld [vmem:[#allocation5 + $0x188] sm:$0xff]  ;;  %v1273_v4 = vld [vmem:[#allocation5 + $0x100] sm:$0xff]  ;;  %v94_v10 = vld [vmem:[#allocation2 + $0x30] sm:$0xff] }
  0x29   :  { %638 = vmatpush.bf16.msra.mxu1 %v1251_v21  ;;  %v1298_v3 = vld [vmem:[#allocation5 + $0x1c8] sm:$0xff]  ;;  %v1281_v5 = vld [vmem:[#allocation5 + $0x140] sm:$0xff]  ;;  %v95_v11 = vld [vmem:[#allocation2 + $0x38] sm:$0xff]  ;;  %v102_v14 = vpack.c.bf16 %v94_v10, %v94_v10 }
  0x2a   :  { %651 = vmatpush.bf16.msra.mxu2 %v1259_v22  ;;  %v1289_v6 = vld [vmem:[#allocation5 + $0x180] sm:$0xff]  ;;  %v93_v8 = vld [vmem:[#allocation2 + $0x28] sm:$0xff]  ;;  %v103_v15 = vpack.c.bf16 %v95_v11, %v95_v11  ;;  %v1312_v16 = vld [vmem:[#allocation7 + $0x38] sm:$0xff] }
  0x2b   :  { %664 = vmatpush.bf16.msra.mxu3 %v1267_v23  ;;  %v92_v7 = vld [vmem:[#allocation2 + $0x20] sm:$0xff]  ;;  %v101_v13 = vpack.c.bf16 %v93_v8, %v93_v8  ;;  %v1311_v17 = vld [vmem:[#allocation7 + $0x30] sm:$0xff]  ;;  %v1310_v18 = vld [vmem:[#allocation7 + $0x28] sm:$0xff] }
  0x2c   :  { %626 = vmatpush.bf16.msra.mxu0 %v1242_v24  ;;  %v1297_v9 = vld [vmem:[#allocation5 + $0x1c0] sm:$0xff]  ;;  %v100_v12 = vpack.c.bf16 %v92_v7, %v92_v7  ;;  %v1308_v21 = vld [vmem:[#allocation7 + $0x18] sm:$0xff]  ;;  %v1307_v23 = vld [vmem:[#allocation7 + $0x10] sm:$0xff] }
  0x2d   :  { %639 = vmatpush.bf16.msra.mxu1 %v1250_v25  ;;  %v1309_v19 = vld [vmem:[#allocation7 + $0x20] sm:$0xff]  ;;  %v1320_v34 = vld [vmem:[#allocation8 + $0x38] sm:$0xff]  ;;  %v1318_v37 = vld [vmem:[#allocation8 + $0x28] sm:$0xff] }
  0x2e   :  { %652 = vmatpush.bf16.msra.mxu2 %v1258_v26  ;;  %v1330_v7 = vld [vmem:[%s1536_s6] ss:$0 sm:$0xff] }
  0x2f   :  { %665 = vmatpush.bf16.msra.mxu3 %v1266_v27 }
  0x30   :  { %627 = vmatpush.bf16.msra.mxu0 %v1241_v28  ;;  %v1306_v28 = vld [vmem:[#allocation7 + $0x8] sm:$0xff] }
  0x31   :  { %640 = vmatpush.bf16.msra.mxu1 %v1249_v29  ;;  %v1328_v29 = vld [vmem:[%s1532_s2] ss:$0 sm:$0xff] }
  0x32   :  { %653 = vmatpush.bf16.msra.mxu2 %v1257_v30  ;;  %v1305_v30 = vld [vmem:[#allocation7] sm:$0xff] }
  0x33   :  { %666 = vmatpush.bf16.msra.mxu3 %v1265_v31  ;;  %628 = vmatmul.bf16.vlgmr.msra.gmra.mxu0 %v96_v41 }
  0x34   :  { %672 = vmatpush.bf16.msrb.mxu0 %v1280_v32  ;;  %641 = vmatmul.bf16.vlgmr.msra.gmra.mxu1 %v97_v43 }
  0x35   :  { %685 = vmatpush.bf16.msrb.mxu1 %v1288_v35  ;;  %654 = vmatmul.bf16.vlgmr.msra.gmra.mxu2 %v98_v40  ;;  %v1319_v35 = vld [vmem:[#allocation8 + $0x30] sm:$0xff] }
  0x36   :  { %698 = vmatpush.bf16.msrb.mxu2 %v1296_v38  ;;  %667 = vmatmul.bf16.vlgmr.msra.gmra.mxu3 %v99_v42 }
  0x37   :  { %711 = vmatpush.bf16.msrb.mxu3 %v1304_v39  ;;  %v1317_v39 = vld [vmem:[#allocation8 + $0x20] sm:$0xff] }
  0x38   :  { %673 = vmatpush.bf16.msrb.mxu0 %v1279_v44  ;;  %v1316_v44 = vld [vmem:[#allocation8 + $0x18] sm:$0xff] }
  0x39   :  { %686 = vmatpush.bf16.msrb.mxu1 %v1287_v45 }
  0x3a   :  { %699 = vmatpush.bf16.msrb.mxu2 %v1295_v46 }
  0x3b   :  { %712 = vmatpush.bf16.msrb.mxu3 %v1303_v47 }
  0x3c   :  { %674 = vmatpush.bf16.msrb.mxu0 %v1278_v48 }
  0x3d   :  { %687 = vmatpush.bf16.msrb.mxu1 %v1286_v49 }
  0x3e   :  { %700 = vmatpush.bf16.msrb.mxu2 %v1294_v50 }
  0x3f   :  { %713 = vmatpush.bf16.msrb.mxu3 %v1302_v51 }
  0x40   :  { %675 = vmatpush.bf16.msrb.mxu0 %v1277_v52 }
  0x41   :  { %688 = vmatpush.bf16.msrb.mxu1 %v1285_v53 }
  0x42   :  { %701 = vmatpush.bf16.msrb.mxu2 %v1293_v54 }
  0x43   :  { %714 = vmatpush.bf16.msrb.mxu3 %v1301_v55 }
  0x44   :  { %676 = vmatpush.bf16.msrb.mxu0 %v1276_v56 }
  0x45   :  { %689 = vmatpush.bf16.msrb.mxu1 %v1284_v57 }
  0x46   :  { %702 = vmatpush.bf16.msrb.mxu2 %v1292_v58 }
  0x47   :  { %715 = vmatpush.bf16.msrb.mxu3 %v1300_v59  ;;  %v1315_v59 = vld [vmem:[#allocation8 + $0x10] sm:$0xff] }
  0x48   :  { %677 = vmatpush.bf16.msrb.mxu0 %v1275_v60  ;;  %v1314_v60 = vld [vmem:[#allocation8 + $0x8] sm:$0xff] }
  0x49   :  { %690 = vmatpush.bf16.msrb.mxu1 %v1283_v61  ;;  %v1313_v61 = vld [vmem:[#allocation8] sm:$0xff] }
  0x4a   :  { %703 = vmatpush.bf16.msrb.mxu2 %v1291_v62  ;;  %v1329_v62 = vld [vmem:[%s1534_s4] ss:$0 sm:$0xff] }
  0x4b   :  { %716 = vmatpush.bf16.msrb.mxu3 %v1299_v63 }
  0x4c   :  { %678 = vmatpush.bf16.msrb.mxu0 %v1274_v0 }
  0x4d   :  { %691 = vmatpush.bf16.msrb.mxu1 %v1282_v1 }
  0x4e   :  { %704 = vmatpush.bf16.msrb.mxu2 %v1290_v2 }
  0x4f   :  { %717 = vmatpush.bf16.msrb.mxu3 %v1298_v3 }
  0x50   :  { %679 = vmatpush.bf16.msrb.mxu0 %v1273_v4 }
  0x51   :  { %692 = vmatpush.bf16.msrb.mxu1 %v1281_v5 }
  0x52   :  { %705 = vmatpush.bf16.msrb.mxu2 %v1289_v6 }
  0x53   :  { %718 = vmatpush.bf16.msrb.mxu3 %v1297_v9  ;;  %680 = vmatmul.bf16.vlgmr.msrb.gmra.mxu0 %v100_v12 }
  0x54   :  { %693 = vmatmul.bf16.vlgmr.msrb.gmra.mxu1 %v101_v13  ;;  %799 = vmatpush.bf16.msra.mxu0 %v1312_v16 }
  0x55   :  { %706 = vmatmul.bf16.vlgmr.msrb.gmra.mxu2 %v102_v14  ;;  %887 = vmatpush.bf16.msra.mxu1 %v1320_v34 }
  0x56   :  { %719 = vmatmul.bf16.vlgmr.msrb.gmra.mxu3 %v103_v15 }
  0x58   :  { %800 = vmatpush.bf16.msra.mxu0 %v1311_v17 }
  0x59   :  { %888 = vmatpush.bf16.msra.mxu1 %v1319_v35 }
  0x5c   :  { %801 = vmatpush.bf16.msra.mxu0 %v1310_v18 }
  0x5d   :  { %889 = vmatpush.bf16.msra.mxu1 %v1318_v37 }
  0x60   :  { %802 = vmatpush.bf16.msra.mxu0 %v1309_v19 }
  0x61   :  { %890 = vmatpush.bf16.msra.mxu1 %v1317_v39 }
  0x64   :  { %803 = vmatpush.bf16.msra.mxu0 %v1308_v21 }
  0x65   :  { %891 = vmatpush.bf16.msra.mxu1 %v1316_v44 }
  0x68   :  { %804 = vmatpush.bf16.msra.mxu0 %v1307_v23 }
  0x69   :  { %892 = vmatpush.bf16.msra.mxu1 %v1315_v59 }
  0x6c   :  { %805 = vmatpush.bf16.msra.mxu0 %v1306_v28 }
  0x6d   :  { %893 = vmatpush.bf16.msra.mxu1 %v1314_v60 }
  0x70   :  { %806 = vmatpush.bf16.msra.mxu0 %v1305_v30 }
  0x71   :  { %894 = vmatpush.bf16.msra.mxu1 %v1313_v61 }
  0xb0   :  { %v629_v20 = vpop.f32.mrf.mxu0 }
  0xb1   :  { %v642_v22 = vpop.f32.mrf.mxu1  ;;  %v630_v33 = vadd.f32 %v1328_v29, %v629_v20 }
  0xb3   :  { %v643_v36 = vadd.f32 %v642_v22, %v630_v33 }
  0xb8   :  { %v655_v24 = vpop.f32.mrf.mxu2  ;;  %v631_v26 = vpop.f32.mrf.mxu0 }
  0xb9   :  { %v668_v25 = vpop.f32.mrf.mxu3  ;;  %v644_v27 = vpop.f32.mrf.mxu1  ;;  %v656_v38 = vadd.f32 %v655_v24, %v643_v36 }
  0xbb   :  { %v669_v40 = vadd.f32 %v668_v25, %v656_v38 }
  0xc0   :  { %v657_v31 = vpop.f32.mrf.mxu2 }
  0xc1   :  { %v670_v32 = vpop.f32.mrf.mxu3 }
  0xd0   :  { %v681_v41 = vpop.f32.mrf.mxu0 }
  0xd1   :  { %v694_v42 = vpop.f32.mrf.mxu1  ;;  %v682_v43 = vadd.f32 %v681_v41, %v669_v40 }
  0xd3   :  { %v695_v45 = vadd.f32 %v694_v42, %v682_v43 }
  0xd8   :  { %v707_v46 = vpop.f32.mrf.mxu2  ;;  %v683_v49 = vpop.f32.mrf.mxu0 }
  0xd9   :  { %v720_v47 = vpop.f32.mrf.mxu3  ;;  %v708_v48 = vadd.f32 %v707_v46, %v695_v45  ;;  %v696_v50 = vpop.f32.mrf.mxu1 }
  0xdb   :  { %v721_v51 = vadd.f32 %v720_v47, %v708_v48 }
  0xdd   :  { %v724_v52 = vpack.c.bf16 %v721_v51, %v721_v51 }
  0xdf   :  { %v725_v53 = vunpack.c.l.bf16 %v724_v52 }
  0xe0   :  { %v709_v54 = vpop.f32.mrf.mxu2 }
  0xe1   :  { %v722_v55 = vpop.f32.mrf.mxu3  ;;  %vm726_vm0 = vcmp.gt.f32.partialorder %v725_v53, 0.0  ;;  %v727_v56 = vmul.f32 0.20019531, %v725_v53 }
  0xe2   :  { %vm729_vm1 = vmpackc.low %vm726_vm0, %vm726_vm0 }
  0xe3   :  { %v728_v57 = vpack.c.bf16 %v727_v56, %v727_v56 }
  0xe5   :  { %v730_v58 = vsel %vm729_vm1, %v724_v52, %v728_v57 }
  0xe6   :  { %807 = vmatmul.bf16.vlgmr.msra.gmra.mxu0 %v730_v58 }
 0x163   :  { %v808_v63 = vpop.f32.mrf.mxu0 }
 0x164   :  { %v809_v0 = vadd.f32 %v1329_v62, %v808_v63 }
 0x166   :  { %v812_v1 = vpack.c.bf16 %v809_v0, %v809_v0 }
 0x168   :  { %v813_v2 = vunpack.c.l.bf16 %v812_v1 }
 0x16a   :  { %vm814_vm2 = vcmp.gt.f32.partialorder %v813_v2, 0.0  ;;  %v815_v3 = vmul.f32 0.20019531, %v813_v2 }
 0x16b   :  { %v810_v4 = vpop.f32.mrf.mxu0  ;;  %vm817_vm3 = vmpackc.low %vm814_vm2, %vm814_vm2 }
 0x16c   :  { %v816_v5 = vpack.c.bf16 %v815_v3, %v815_v3 }
 0x16e   :  { %v818_v6 = vsel %vm817_vm3, %v812_v1, %v816_v5 }
 0x16f   :  { %895 = vmatmul.bf16.vlgmr.msra.gmra.mxu1 %v818_v6 }
 0x1ec   :  { %v896_v8 = vpop.f32.mrf.mxu1 }
 0x1ed   :  { %v897_v9 = vadd.f32 %v1330_v7, %v896_v8 }
 0x1ef   :  { %v900_v10 = vpack.c.bf16 %v897_v9, %v897_v9 }
 0x1f1   :  { %901 = vst [vmem:[#allocation10] sm:$0xf] %v900_v10 }
 0x1f2   :  { %912 = dma.vmem_to_hbm [thread:$0]  %s908_s25, 64, %s910_s27, [#allocation4]  }
 0x1f4   :  { %v898_v11 = vpop.f32.mrf.mxu1 }
 0x1f5   :  { %1457 = dma.done.wait [#allocation4], 64  }
 0x1f6   :  { %1458 = vsyncadd [#allocation4], 4294967232 }
 0x1f7   :  { %917 = vsyncpa [#allocation3], 1 }
 0x1f8   :  { %918 = vsyncpa [#allocation6], 1 }
 0x1f9   :  { %919 = vsyncpa [#allocation9], 1 }
 0x1fa   :  { %920 = vsyncpa [#allocation4], 1 }

</bundles_post_ra>
